<compile_context>
chip_gen: v7x
topology: tpu7x:2x2x1
jax: 0.10.0
libtpu: 0.0.40
codegen_flags: <defaults>
</compile_context>

<pallas_src>
import functools

import jax
import jax.numpy as jnp
from jax import lax
from jax.experimental import pallas as pl
from jax.experimental.pallas import tpu as pltpu

EPS = 1e-5


def _round_up(n, m):
    return ((n + m - 1) // m) * m


def _classifier_kernel(num_res_blocks,
                       x_ref, w1_ref, b1_ref, rw_ref, rb_ref, wout_ref, bout_ref,
                       o_ref):
    # fc1 (+ folded BN) + ReLU  (Dropout == identity in eval mode).
    # MXU operands are bf16; accumulation stays f32 via preferred_element_type.
    h = jnp.dot(x_ref[...], w1_ref[...],
                preferred_element_type=jnp.float32) + b1_ref[...]
    h = jnp.maximum(h, 0.0)

    # Residual blocks: fc (+ folded BN) -> ReLU -> + identity   (static unroll).
    for i in range(num_res_blocks):
        y = jnp.dot(h.astype(jnp.bfloat16), rw_ref[i],
                    preferred_element_type=jnp.float32) + rb_ref[i]
        y = jnp.maximum(y, 0.0)
        h = h + y

    # fc_out (lane-dense, zero-padded output columns -> unmasked vst).
    out = jnp.dot(h.astype(jnp.bfloat16), wout_ref[...],
                  preferred_element_type=jnp.float32) + bout_ref[...]
    o_ref[...] = out.astype(o_ref.dtype)


def _fold_and_pad_params(params, pad_input_dim):
    """Fold eval-mode BatchNorm into the linears, zero-pad feature dims to 128,
    and cast the matmul weights to bf16 (biases stay f32)."""
    # --- fold BN1 into fc1 ---
    scale1 = params["g1"] * lax.rsqrt(params["v1"] + EPS)          # (1, H)
    w1 = params["w1"] * scale1                                      # (in, H)
    b1 = (params["b1"] - params["m1"]) * scale1 + params["bt1"]     # (1, H)

    # --- fold per-block BN into each residual fc ---
    rscale = params["rg"] * lax.rsqrt(params["rv"] + EPS)           # (R, 1, H)
    rw = params["rw"] * rscale                                      # (R, H, H)
    rb = (params["rb"] - params["rm"]) * rscale + params["rbt"]     # (R, 1, H)

    wout, bout = params["wout"], params["bout"]

    In, H = w1.shape
    C = wout.shape[1]
    Hp = _round_up(H, 128)
    Cp = _round_up(C, 128)
    Inp = _round_up(In, 128) if pad_input_dim else In

    if Inp != In:                                   # zero rows: dot unchanged
        w1 = jnp.pad(w1, ((0, Inp - In), (0, 0)))
    if Hp != H:                                     # zero-preserving through relu/residual
        w1 = jnp.pad(w1, ((0, 0), (0, Hp - H)))
        b1 = jnp.pad(b1, ((0, 0), (0, Hp - H)))
        rw = jnp.pad(rw, ((0, 0), (0, Hp - H), (0, Hp - H)))
        rb = jnp.pad(rb, ((0, 0), (0, 0), (0, Hp - H)))
        wout = jnp.pad(wout, ((0, Hp - H), (0, 0)))
    if Cp != C:
        wout = jnp.pad(wout, ((0, 0), (0, Cp - C)))
        bout = jnp.pad(bout, ((0, 0), (0, Cp - C)))

    # bf16 MXU operands: ~2x matmul throughput, half the weight bytes.
    w1 = w1.astype(jnp.bfloat16)
    rw = rw.astype(jnp.bfloat16)
    wout = wout.astype(jnp.bfloat16)
    return w1, b1, rw, rb, wout, bout, Inp, Hp, Cp


def improved_final_classifier(x, params, *, batch_tile=None, pad_input_lanes=None):
    """x: (B, input_dim) float32. Returns (B, num_classes) float32."""
    B, input_dim = x.shape
    num_classes = params["wout"].shape[1]
    num_res_blocks = params["rw"].shape[0]

    # Lane-dense contraction dim only pays when x traffic is small relative to
    # the weight-resident matmuls (padding multiplies x HBM bytes).
    if pad_input_lanes is None:
        pad_input_lanes = (input_dim % 128 != 0) and (B * input_dim <= (1 << 22))

    w1, b1, rw, rb, wout, bout, Inp, Hp, Cp = _fold_and_pad_params(
        params, pad_input_lanes)

    # Batch tiling:
    #  * tiny batch  -> one grid step (sublane-padded);
    #  * mid batch   -> >=2 tiles so dimension_semantics=("parallel",) shards
    #                   across v7x's two TensorCores;
    #  * large batch -> 512-row tiles (multiple of 128/256 MXU rows; amortizes
    #                   the ~0.35us per-grid-step overhead).
    if batch_tile is None:
        if B <= 16:
            batch_tile = _round_up(B, 8)
        else:
            batch_tile = min(512, _round_up(pl.cdiv(B, 2), 8))
    Bp = _round_up(B, batch_tile)

    x = x.astype(jnp.bfloat16)
    if Bp != B or Inp != input_dim:
        x = jnp.pad(x, ((0, Bp - B), (0, Inp - input_dim)))

    kernel = functools.partial(_classifier_kernel, num_res_blocks)

    # Grid-invariant weights/biases: single-buffer (constant index_map =>
    # default double-buffering only doubles VMEM, no overlap benefit).
    def resident(shape):
        return pl.BlockSpec(shape, lambda i: (0,) * len(shape),
                            pipeline_mode=pl.Buffered(1))

    grid = (Bp // batch_tile,)
    in_specs = [
        pl.BlockSpec((batch_tile, Inp), lambda i: (i, 0)),   # x (bf16)
        resident((Inp, Hp)),                                 # fused fc1 weight (bf16)
        resident((1, Hp)),                                   # fused fc1 bias (f32)
        resident((num_res_blocks, Hp, Hp)),                  # fused res weights (bf16)
        resident((num_res_blocks, 1, Hp)),                   # fused res biases (f32)
        resident((Hp, Cp)),                                  # fc_out weight (bf16, padded)
        resident((1, Cp)),                                   # fc_out bias (f32, padded)
    ]
    out_specs = pl.BlockSpec((batch_tile, Cp), lambda i: (i, 0))

    # Explicit scoped-VMEM limit sized from the actual footprint (defaults are
    # 16 MiB on v5e / 32 MiB on v6e+). Clamped below v7x's 64 MiB physical VMEM.
    weight_bytes = (Inp * Hp + num_res_blocks * Hp * Hp + Hp * Cp) * 2   # bf16, 1-buffered
    bias_bytes = (Hp + num_res_blocks * Hp + Cp) * 4
    io_bytes = 2 * batch_tile * Inp * 2 + 2 * batch_tile * Cp * 4        # 2-buffered tiles
    act_bytes = 4 * batch_tile * Hp * 4                                  # h/y temporaries
    vmem_bytes = int(1.5 * (weight_bytes + bias_bytes + io_bytes + act_bytes)) + (4 << 20)
    vmem_bytes = max(16 << 20, min(vmem_bytes, 60 << 20))

    flops = 2 * Bp * (Inp * Hp + num_res_blocks * Hp * Hp + Hp * Cp)
    bytes_accessed = Bp * Inp * 2 + weight_bytes + bias_bytes + Bp * Cp * 4

    out = pl.pallas_call(
        kernel,
        out_shape=jax.ShapeDtypeStruct((Bp, Cp), jnp.float32),
        grid=grid,
        in_specs=in_specs,
        out_specs=out_specs,
        compiler_params=pltpu.CompilerParams(
            dimension_semantics=("parallel",),
            vmem_limit_bytes=vmem_bytes),
        cost_estimate=pl.CostEstimate(
            flops=flops, transcendentals=0, bytes_accessed=bytes_accessed),
    )(x, w1, b1, rw, rb, wout, bout)

    # TODO(synk): for hidden_dim large enough that num_res_blocks*Hp^2 bf16
    # weights approach ~half of VMEM (Hp >= ~2048 on v7x), tile the residual /
    # fc_out weights over a reduction grid axis with a VMEM f32 accumulator
    # instead of keeping them fully resident.
    return out[:B, :num_classes]


def init_params(key, input_dim, hidden_dim, num_classes, num_res_blocks):
    ks = jax.random.split(key, 16)
    return {
        "w1":  0.05 * jax.random.normal(ks[0], (input_dim, hidden_dim), jnp.float32),
        "b1":  0.05 * jax.random.normal(ks[1], (1, hidden_dim), jnp.float32),
        "g1":  jax.random.uniform(ks[2], (1, hidden_dim), jnp.float32, 0.5, 1.5),
        "bt1": 0.05 * jax.random.normal(ks[3], (1, hidden_dim), jnp.float32),
        "m1":  0.1 * jax.random.normal(ks[4], (1, hidden_dim), jnp.float32),
        "v1":  jax.random.uniform(ks[5], (1, hidden_dim), jnp.float32, 0.5, 1.5),
        "rw":  0.05 * jax.random.normal(ks[6], (num_res_blocks, hidden_dim, hidden_dim), jnp.float32),
        "rb":  0.05 * jax.random.normal(ks[7], (num_res_blocks, 1, hidden_dim), jnp.float32),
        "rg":  jax.random.uniform(ks[8], (num_res_blocks, 1, hidden_dim), jnp.float32, 0.5, 1.5),
        "rbt": 0.05 * jax.random.normal(ks[9], (num_res_blocks, 1, hidden_dim), jnp.float32),
        "rm":  0.1 * jax.random.normal(ks[10], (num_res_blocks, 1, hidden_dim), jnp.float32),
        "rv":  jax.random.uniform(ks[11], (num_res_blocks, 1, hidden_dim), jnp.float32, 0.5, 1.5),
        "wout": 0.05 * jax.random.normal(ks[12], (hidden_dim, num_classes), jnp.float32),
        "bout": 0.05 * jax.random.normal(ks[13], (1, num_classes), jnp.float32),
    }


def reference_forward(x, p):
    """Pure-JAX f32 reference matching PyTorch eval-mode forward (BN un-fused)."""
    h = x @ p["w1"] + p["b1"]
    h = (h - p["m1"]) * (p["g1"] / jnp.sqrt(p["v1"] + EPS)) + p["bt1"]
    h = jnp.maximum(h, 0.0)
    for i in range(p["rw"].shape[0]):
        y = h @ p["rw"][i] + p["rb"][i]
        y = (y - p["rm"][i]) * (p["rg"][i] / jnp.sqrt(p["rv"][i] + EPS)) + p["rbt"][i]
        y = jnp.maximum(y, 0.0)
        h = y + h
    return h @ p["wout"] + p["bout"]


if __name__ == "__main__":
    B, INPUT_DIM, HIDDEN_DIM, NUM_CLASSES, NUM_RES_BLOCKS = 16, 32, 64, 8, 2

    key = jax.random.PRNGKey(0)
    k_x, k_p = jax.random.split(key)
    x = jax.random.normal(k_x, (B, INPUT_DIM), jnp.float32)
    params = init_params(k_p, INPUT_DIM, HIDDEN_DIM, NUM_CLASSES, NUM_RES_BLOCKS)

    out = improved_final_classifier(x, params)
    out = jax.block_until_ready(out)

    ref = reference_forward(x, params)
    assert out.shape == (B, NUM_CLASSES)
    # bf16 MXU operands with f32 accumulation over a 3-matmul chain: ~1e-2 rel.
    assert jnp.allclose(out, ref, atol=2e-2, rtol=2e-2), "mismatch vs JAX reference"

    print("KERNEL_OK")
</pallas_src>

<mosaic_0001>
module attributes {stable_mosaic.version = 11 : i64} {
  func.func @_classifier_kernel(%arg0: i32, %arg1: memref<16x128xbf16, #tpu.memory_space<vmem>>, %arg2: memref<128x128xbf16, #tpu.memory_space<vmem>>, %arg3: memref<1x128xf32, #tpu.memory_space<vmem>>, %arg4: memref<2x128x128xbf16, #tpu.memory_space<vmem>>, %arg5: memref<2x1x128xf32, #tpu.memory_space<vmem>>, %arg6: memref<128x128xbf16, #tpu.memory_space<vmem>>, %arg7: memref<1x128xf32, #tpu.memory_space<vmem>>, %arg8: memref<16x128xf32, #tpu.memory_space<vmem>>) attributes {dimension_semantics = [#tpu.dimension_semantics<parallel>], iteration_bounds = array<i64: 1>, scalar_prefetch = 0 : i64, scratch_operands = 0 : i64, tpu.core_type = #tpu.core_type<tc>, window_params = [{transform_indices = @transform_0, window_bounds = array<i64: 16, 128>}, {pipeline_mode = #tpu.pipeline_mode<synchronous>, transform_indices = @transform_1, window_bounds = array<i64: 128, 128>}, {pipeline_mode = #tpu.pipeline_mode<synchronous>, transform_indices = @transform_2, window_bounds = array<i64: 1, 128>}, {pipeline_mode = #tpu.pipeline_mode<synchronous>, transform_indices = @transform_3, window_bounds = array<i64: 2, 128, 128>}, {pipeline_mode = #tpu.pipeline_mode<synchronous>, transform_indices = @transform_4, window_bounds = array<i64: 2, 1, 128>}, {pipeline_mode = #tpu.pipeline_mode<synchronous>, transform_indices = @transform_5, window_bounds = array<i64: 128, 128>}, {pipeline_mode = #tpu.pipeline_mode<synchronous>, transform_indices = @transform_6, window_bounds = array<i64: 1, 128>}, {transform_indices = @transform_7, window_bounds = array<i64: 16, 128>}]} {
    %c0 = arith.constant 0 : index
    %c0_0 = arith.constant 0 : index
    %0 = vector.load %arg1[%c0, %c0_0] : memref<16x128xbf16, #tpu.memory_space<vmem>>, vector<16x128xbf16>
    %c0_1 = arith.constant 0 : index
    %c0_2 = arith.constant 0 : index
    %1 = vector.load %arg2[%c0_1, %c0_2] : memref<128x128xbf16, #tpu.memory_space<vmem>>, vector<128x128xbf16>
    %cst = arith.constant dense<0.000000e+00> : vector<16x128xf32>
    %2 = tpu.matmul %0, %1, %cst {dimension_numbers = #tpu.dot_dimension_numbers<[1], [0], [0], [1], [0, 0, 1, 1], [], []>} : vector<16x128xbf16>, vector<128x128xbf16>, vector<16x128xf32> -> vector<16x128xf32>
    %c0_3 = arith.constant 0 : index
    %c0_4 = arith.constant 0 : index
    %3 = vector.load %arg3[%c0_3, %c0_4] : memref<1x128xf32, #tpu.memory_space<vmem>>, vector<1x128xf32>
    %4 = vector.broadcast %3 : vector<1x128xf32> to vector<16x128xf32>
    %5 = arith.addf %2, %4 : vector<16x128xf32>
    %cst_5 = arith.constant 0.000000e+00 : f32
    %6 = vector.broadcast %cst_5 : f32 to vector<16x128xf32>
    %7 = arith.maximumf %5, %6 : vector<16x128xf32>
    %8 = arith.truncf %7 : vector<16x128xf32> to vector<16x128xbf16>
    %c0_6 = arith.constant 0 : index
    %c0_7 = arith.constant 0 : index
    %c0_8 = arith.constant 0 : index
    %9 = vector.load %arg4[%c0_6, %c0_7, %c0_8] : memref<2x128x128xbf16, #tpu.memory_space<vmem>>, vector<1x128x128xbf16>
    %10 = vector.shape_cast %9 : vector<1x128x128xbf16> to vector<128x128xbf16>
    %cst_9 = arith.constant dense<0.000000e+00> : vector<16x128xf32>
    %11 = tpu.matmul %8, %10, %cst_9 {dimension_numbers = #tpu.dot_dimension_numbers<[1], [0], [0], [1], [0, 0, 1, 1], [], []>} : vector<16x128xbf16>, vector<128x128xbf16>, vector<16x128xf32> -> vector<16x128xf32>
    %c0_10 = arith.constant 0 : index
    %c0_11 = arith.constant 0 : index
    %c0_12 = arith.constant 0 : index
    %12 = vector.load %arg5[%c0_10, %c0_11, %c0_12] : memref<2x1x128xf32, #tpu.memory_space<vmem>>, vector<1x1x128xf32>
    %13 = vector.shape_cast %12 : vector<1x1x128xf32> to vector<1x128xf32>
    %14 = vector.broadcast %13 : vector<1x128xf32> to vector<16x128xf32>
    %15 = arith.addf %11, %14 : vector<16x128xf32>
    %cst_13 = arith.constant 0.000000e+00 : f32
    %16 = vector.broadcast %cst_13 : f32 to vector<16x128xf32>
    %17 = arith.maximumf %15, %16 : vector<16x128xf32>
    %18 = arith.addf %7, %17 : vector<16x128xf32>
    %19 = arith.truncf %18 : vector<16x128xf32> to vector<16x128xbf16>
    %c1 = arith.constant 1 : index
    %c0_14 = arith.constant 0 : index
    %c0_15 = arith.constant 0 : index
    %20 = vector.load %arg4[%c1, %c0_14, %c0_15] : memref<2x128x128xbf16, #tpu.memory_space<vmem>>, vector<1x128x128xbf16>
    %21 = vector.shape_cast %20 : vector<1x128x128xbf16> to vector<128x128xbf16>
    %cst_16 = arith.constant dense<0.000000e+00> : vector<16x128xf32>
    %22 = tpu.matmul %19, %21, %cst_16 {dimension_numbers = #tpu.dot_dimension_numbers<[1], [0], [0], [1], [0, 0, 1, 1], [], []>} : vector<16x128xbf16>, vector<128x128xbf16>, vector<16x128xf32> -> vector<16x128xf32>
    %c1_17 = arith.constant 1 : index
    %c0_18 = arith.constant 0 : index
    %c0_19 = arith.constant 0 : index
    %23 = vector.load %arg5[%c1_17, %c0_18, %c0_19] : memref<2x1x128xf32, #tpu.memory_space<vmem>>, vector<1x1x128xf32>
    %24 = vector.shape_cast %23 : vector<1x1x128xf32> to vector<1x128xf32>
    %25 = vector.broadcast %24 : vector<1x128xf32> to vector<16x128xf32>
    %26 = arith.addf %22, %25 : vector<16x128xf32>
    %cst_20 = arith.constant 0.000000e+00 : f32
    %27 = vector.broadcast %cst_20 : f32 to vector<16x128xf32>
    %28 = arith.maximumf %26, %27 : vector<16x128xf32>
    %29 = arith.addf %18, %28 : vector<16x128xf32>
    %30 = arith.truncf %29 : vector<16x128xf32> to vector<16x128xbf16>
    %c0_21 = arith.constant 0 : index
    %c0_22 = arith.constant 0 : index
    %31 = vector.load %arg6[%c0_21, %c0_22] : memref<128x128xbf16, #tpu.memory_space<vmem>>, vector<128x128xbf16>
    %cst_23 = arith.constant dense<0.000000e+00> : vector<16x128xf32>
    %32 = tpu.matmul %30, %31, %cst_23 {dimension_numbers = #tpu.dot_dimension_numbers<[1], [0], [0], [1], [0, 0, 1, 1], [], []>} : vector<16x128xbf16>, vector<128x128xbf16>, vector<16x128xf32> -> vector<16x128xf32>
    %c0_24 = arith.constant 0 : index
    %c0_25 = arith.constant 0 : index
    %33 = vector.load %arg7[%c0_24, %c0_25] : memref<1x128xf32, #tpu.memory_space<vmem>>, vector<1x128xf32>
    %34 = vector.broadcast %33 : vector<1x128xf32> to vector<16x128xf32>
    %35 = arith.addf %32, %34 : vector<16x128xf32>
    %c0_26 = arith.constant 0 : index
    %c0_27 = arith.constant 0 : index
    %36 = vector.load %arg8[%c0_26, %c0_27] : memref<16x128xf32, #tpu.memory_space<vmem>>, vector<16x128xf32>
    tpu.vector_store %arg8[%c0_26, %c0_27], %35 {strides = array<i32>} : memref<16x128xf32, #tpu.memory_space<vmem>>, vector<16x128xf32>,
    return
  }
  func.func @transform_0(%arg0: i32) -> (i32, i32) {
    %c0_i32 = arith.constant 0 : i32
    %c0_i32_0 = arith.constant 0 : i32
    return %arg0, %c0_i32 : i32, i32
  }
  func.func @transform_1(%arg0: i32) -> (i32, i32) {
    %c0_i32 = arith.constant 0 : i32
    %c0_i32_0 = arith.constant 0 : i32
    %c0_i32_1 = arith.constant 0 : i32
    return %c0_i32, %c0_i32_0 : i32, i32
  }
  func.func @transform_2(%arg0: i32) -> (i32, i32) {
    %c0_i32 = arith.constant 0 : i32
    %c0_i32_0 = arith.constant 0 : i32
    %c0_i32_1 = arith.constant 0 : i32
    return %c0_i32, %c0_i32_0 : i32, i32
  }
  func.func @transform_3(%arg0: i32) -> (i32, i32, i32) {
    %c0_i32 = arith.constant 0 : i32
    %c0_i32_0 = arith.constant 0 : i32
    %c0_i32_1 = arith.constant 0 : i32
    %c0_i32_2 = arith.constant 0 : i32
    return %c0_i32, %c0_i32_0, %c0_i32_1 : i32, i32, i32
  }
  func.func @transform_4(%arg0: i32) -> (i32, i32, i32) {
    %c0_i32 = arith.constant 0 : i32
    %c0_i32_0 = arith.constant 0 : i32
    %c0_i32_1 = arith.constant 0 : i32
    %c0_i32_2 = arith.constant 0 : i32
    return %c0_i32, %c0_i32_0, %c0_i32_1 : i32, i32, i32
  }
  func.func @transform_5(%arg0: i32) -> (i32, i32) {
    %c0_i32 = arith.constant 0 : i32
    %c0_i32_0 = arith.constant 0 : i32
    %c0_i32_1 = arith.constant 0 : i32
    return %c0_i32, %c0_i32_0 : i32, i32
  }
  func.func @transform_6(%arg0: i32) -> (i32, i32) {
    %c0_i32 = arith.constant 0 : i32
    %c0_i32_0 = arith.constant 0 : i32
    %c0_i32_1 = arith.constant 0 : i32
    return %c0_i32, %c0_i32_0 : i32, i32
  }
  func.func @transform_7(%arg0: i32) -> (i32, i32) {
    %c0_i32 = arith.constant 0 : i32
    %c0_i32_0 = arith.constant 0 : i32
    return %arg0, %c0_i32 : i32, i32
  }
}

</mosaic_0001>

<bundles_post_ra>
// kernel: tpu_custom_call.1
= control target key start
LH: loop header
LB: loop body
LE: loop exit
PB: predicated region body
PF: predicated region fallthrough
CT: control target
= control target key end

     0   :  { %12 = vsyncpa [#allocation3], 0  ;;  %s1080_s0 = inlined_call_operand.hbm [shape: bf16[16,128], index: 0, kind: input, shape index: {}]   ;;  %s1081_s1 = inlined_call_operand.hbm [shape: bf16[128,128], index: 1, kind: input, shape index: {}]   ;;  %s1082_s2 = inlined_call_operand.vmem [shape: f32[1,128], index: 2, kind: input, shape index: {}]   ;;  %s1083_s3 = inlined_call_operand.hbm [shape: bf16[2,128,128], index: 3, kind: input, shape index: {}]   ;;  %s1084_s4 = inlined_call_operand.vmem [shape: f32[2,1,128], index: 4, kind: input, shape index: {}]   ;;  %s1085_s5 = inlined_call_operand.hbm [shape: bf16[128,128], index: 5, kind: input, shape index: {}]   ;;  %s1086_s6 = inlined_call_operand.vmem [shape: f32[1,128], index: 6, kind: input, shape index: {}]   ;;  %s1087_s7 = inlined_call_operand.hbm [shape: f32[16,128], index: 7, kind: output, shape index: {}]  }
   0x1   :  { %13 = vsyncpa [#allocation6], 0 }
   0x2   :  { %14 = vsyncpa [#allocation9], 0 }
   0x3   :  { %15 = vsyncpa [#allocation4], 0  ;;  %s891_s24 = smov [#allocation5]   ;;  %s892_s26 = smov [#allocation2]  }
   0x4   :  { %s33_s25 = sshll.u32 %s891_s24, 4  ;;  %s21_s27 = sshll.u32 %s892_s26, 4  ;;  %s34_s25 = int_to_ptr.vmem [resolvable:$true] %s33_s25  ;;  %s942_s27 = int_to_ptr.vmem [resolvable:$true] %s21_s27 }
   0x5   :  { %s773_s30 = scalar_lea.hbm %s1081_s1, 1024 }
   0x6   :  { %p774_p0 = scmp.ne.s32.totalorder %s1081_s1, %s773_s30  ;;  %p777_p1 = scmp.lt.u32.totalorder %s773_s30, %s1081_s1 }
   0x8   :  { %p779_p2 = pnand %p777_p1, %p774_p0 }
   0xa   :  { %782 = shalt.err (!%p779_p2)
}
   0xb   :  { %s783_s12 = scalar_lea.vmem %s34_s25, 1024  ;;  %p788_p4 = scmp.lt.s32.totalorder %s34_s25, %s34_s25 }
   0xc   :  { %p784_p3 = scmp.ne.s32.totalorder %s34_s25, %s783_s12  ;;  %p789_p5 = scmp.lt.s32.totalorder %s783_s12, %s783_s12 }
   0xe   :  { %p790_p6 = por %p789_p5, %p788_p4 }
  0x10   :  { %p791_p7 = pnand %p790_p6, %p784_p3 }
  0x12   :  { %794 = shalt.err (!%p791_p7)
}
  0x13   :  { %s893_s13 = smov 64   ;;  %s894_s14 = smov 4  }
  0x14   :  { %39 = dma.hbm_to_vmem [thread:$0]  %s1081_s1, 1024, %s34_s25, [#allocation6], %s893_s13, %s893_s13, %s894_s14  }
  0x15   :  { %s795_s19 = scalar_lea.hbm %s1080_s0, 128 }
  0x16   :  { %p796_p8 = scmp.ne.s32.totalorder %s1080_s0, %s795_s19  ;;  %p799_p9 = scmp.lt.u32.totalorder %s795_s19, %s1080_s0 }
  0x18   :  { %p801_p10 = pnand %p799_p9, %p796_p8 }
  0x1a   :  { %804 = shalt.err (!%p801_p10)
}
  0x1b   :  { %s805_s24 = scalar_lea.vmem %s942_s27, 128  ;;  %p810_p12 = scmp.lt.s32.totalorder %s942_s27, %s942_s27 }
  0x1c   :  { %p806_p11 = scmp.ne.s32.totalorder %s942_s27, %s805_s24  ;;  %p811_p13 = scmp.lt.s32.totalorder %s805_s24, %s805_s24 }
  0x1e   :  { %p812_p0 = por %p811_p13, %p810_p12 }
  0x20   :  { %p813_p1 = pnand %p812_p0, %p806_p11 }
  0x22   :  { %816 = shalt.err (!%p813_p1)
}
  0x23   :  { %27 = dma.hbm_to_vmem [thread:$0]  %s1080_s0, 128, %s942_s27, [#allocation3], %s893_s13, %s893_s13, %s894_s14  }
  0x24   :  { %s895_s26 = smov [#allocation7]   ;;  %s896_s29 = smov [#allocation8]  }
  0x25   :  { %s47_s28 = sshll.u32 %s895_s26, 4  ;;  %s61_s30 = sshll.u32 %s896_s29, 4  ;;  %s48_s28 = int_to_ptr.vmem [resolvable:$true] %s47_s28  ;;  %s979_s30 = int_to_ptr.vmem [resolvable:$true] %s61_s30 }
  0x26   :  { %s817_s10 = scalar_lea.hbm %s1083_s3, 2048 }
  0x27   :  { %p818_p2 = scmp.ne.s32.totalorder %s1083_s3, %s817_s10  ;;  %p821_p3 = scmp.lt.u32.totalorder %s817_s10, %s1083_s3 }
  0x29   :  { %p823_p4 = pnand %p821_p3, %p818_p2 }
  0x2b   :  { %826 = shalt.err (!%p823_p4)
}
  0x2c   :  { %s827_s0 = scalar_lea.vmem %s48_s28, 2048  ;;  %p832_p6 = scmp.lt.s32.totalorder %s48_s28, %s48_s28 }
  0x2d   :  { %p828_p5 = scmp.ne.s32.totalorder %s48_s28, %s827_s0  ;;  %p833_p7 = scmp.lt.s32.totalorder %s827_s0, %s827_s0 }
  0x2f   :  { %p834_p8 = por %p833_p7, %p832_p6 }
  0x31   :  { %p835_p9 = pnand %p834_p8, %p828_p5 }
  0x33   :  { %838 = shalt.err (!%p835_p9)
}
  0x34   :  { %53 = dma.hbm_to_vmem [thread:$0]  %s1083_s3, 2048, %s48_s28, [#allocation6], %s893_s13, %s893_s13, %s894_s14  }
  0x35   :  { %s839_s20 = scalar_lea.hbm %s1085_s5, 1024 }
  0x36   :  { %p840_p10 = scmp.ne.s32.totalorder %s1085_s5, %s839_s20  ;;  %p843_p11 = scmp.lt.u32.totalorder %s839_s20, %s1085_s5 }
  0x38   :  { %p845_p12 = pnand %p843_p11, %p840_p10 }
  0x3a   :  { %848 = shalt.err (!%p845_p12)
}
  0x3b   :  { %s849_s1 = scalar_lea.vmem %s979_s30, 1024  ;;  %p854_p0 = scmp.lt.s32.totalorder %s979_s30, %s979_s30 }
  0x3c   :  { %p850_p13 = scmp.ne.s32.totalorder %s979_s30, %s849_s1  ;;  %p855_p1 = scmp.lt.s32.totalorder %s849_s1, %s849_s1 }
  0x3e   :  { %p856_p2 = por %p855_p1, %p854_p0 }
  0x40   :  { %p857_p3 = pnand %p856_p2, %p850_p13 }
  0x42   :  { %860 = shalt.err (!%p857_p3)
}
  0x43   :  { %67 = dma.hbm_to_vmem [thread:$0]  %s1085_s5, 1024, %s979_s30, [#allocation9], %s893_s13, %s893_s13, %s894_s14  }
  0x44   :  { %883 = dma.done.wait [#allocation3], 128  }
  0x45   :  { %884 = vsyncadd [#allocation3], 4294967168 }
  0x46   :  { %885 = dma.done.wait [#allocation6], 3072  }
  0x47   :  { %886 = vsyncadd [#allocation6], 4294964224 }
  0x48   :  { %887 = dma.done.wait [#allocation9], 1024  }
  0x49   :  { %888 = vsyncadd [#allocation9], 4294966272  ;;  %v897_v0 = vmov 0.0   ;;  %vm898_vm0 = vmmov 0   ;;  %v740_v1 = vld [vmem:[#allocation5] sm:$0xff]   ;;  %v741_v2 = vld [vmem:[#allocation5 + $0x8] sm:$0xff]  }
  0x4a   :  { %649 = vmatprep.subr.bf16.mxu0 %v897_v0  ;;  %665 = vmatprep.mubr.msk.bf16.mxu0 %vm898_vm0, %v897_v0  ;;  %v742_v3 = vld [vmem:[#allocation5 + $0x10] sm:$0xff]   ;;  %v749_v4 = vld [vmem:[#allocation7] sm:$0xff]   ;;  %v743_v5 = vld [vmem:[#allocation5 + $0x18] sm:$0xff]   ;;  %s899_s8 = smov [#allocation10]  }
  0x4b   :  { %669 = vmatprep.subr.bf16.mxu1 %v897_v0  ;;  %685 = vmatprep.mubr.msk.bf16.mxu1 %vm898_vm0, %v897_v0  ;;  %v750_v6 = vld [vmem:[#allocation7 + $0x8] sm:$0xff]   ;;  %v744_v7 = vld [vmem:[#allocation5 + $0x20] sm:$0xff]   ;;  %v751_v8 = vld [vmem:[#allocation7 + $0x10] sm:$0xff]   ;;  %s561_s9 = sshll.u32 %s899_s8, 4  ;;  %s562_s9 = int_to_ptr.vmem [resolvable:$true] %s561_s9 }
  0x4c   :  { %650 = vmatpush3.bf16.msra.mxu0 %v740_v1  ;;  %670 = vmatpush3.bf16.msra.mxu1 %v749_v4  ;;  %v745_v9 = vld [vmem:[#allocation5 + $0x28] sm:$0xff]   ;;  %v752_v10 = vld [vmem:[#allocation7 + $0x18] sm:$0xff]   ;;  %v746_v11 = vld [vmem:[#allocation5 + $0x30] sm:$0xff]   ;;  %p866_p5 = scmp.lt.s32.totalorder %s562_s9, %s562_s9 }
  0x4d   :  { %651 = vmatprep.subr.bf16.mxu0 %v897_v0  ;;  %671 = vmatprep.subr.bf16.mxu1 %v897_v0  ;;  %v753_v12 = vld [vmem:[#allocation7 + $0x20] sm:$0xff]   ;;  %v747_v13 = vld [vmem:[#allocation5 + $0x38] sm:$0xff]   ;;  %v754_v14 = vld [vmem:[#allocation7 + $0x28] sm:$0xff]  }
  0x4e   :  { %v748_v15 = vld [vmem:[#allocation2] sm:$0xff]   ;;  %v755_v16 = vld [vmem:[#allocation7 + $0x30] sm:$0xff]   ;;  %v757_v18 = vld [vmem:[#allocation7 + $0x40] sm:$0xff]  }
  0x4f   :  { %v756_v17 = vld [vmem:[#allocation7 + $0x38] sm:$0xff]   ;;  %v758_v19 = vld [vmem:[#allocation7 + $0x48] sm:$0xff]   ;;  %v759_v20 = vld [vmem:[#allocation7 + $0x50] sm:$0xff]  }
  0x50   :  { %652 = vmatpush3.bf16.msra.mxu0 %v741_v2  ;;  %672 = vmatpush3.bf16.msra.mxu1 %v750_v6  ;;  %v760_v21 = vld [vmem:[#allocation7 + $0x58] sm:$0xff]   ;;  %v761_v22 = vld [vmem:[#allocation7 + $0x60] sm:$0xff]   ;;  %v762_v33 = vld [vmem:[#allocation7 + $0x68] sm:$0xff]  }
  0x51   :  { %653 = vmatprep.subr.bf16.mxu0 %v897_v0  ;;  %673 = vmatprep.subr.bf16.mxu1 %v897_v0  ;;  %v575_v23 = vld [vmem:[%s1082_s2] ss:$0 sm:$0xff]  ;;  %v763_v34 = vld [vmem:[#allocation7 + $0x70] sm:$0xff]   ;;  %v765_v36 = vld [vmem:[#allocation8] sm:$0xff]  }
  0x52   :  { %v764_v35 = vld [vmem:[#allocation7 + $0x78] sm:$0xff]   ;;  %v766_v37 = vld [vmem:[#allocation8 + $0x8] sm:$0xff]   ;;  %v767_v38 = vld [vmem:[#allocation8 + $0x10] sm:$0xff]  }
  0x53   :  { %v768_v39 = vld [vmem:[#allocation8 + $0x18] sm:$0xff]   ;;  %v769_v40 = vld [vmem:[#allocation8 + $0x20] sm:$0xff]   ;;  %v770_v53 = vld [vmem:[#allocation8 + $0x28] sm:$0xff]  }
  0x54   :  { %654 = vmatpush3.bf16.msra.mxu0 %v742_v3  ;;  %674 = vmatpush3.bf16.msra.mxu1 %v751_v8  ;;  %v585_v41 = vld [vmem:[%s1084_s4] ss:$0 sm:$0xff]  ;;  %v771_v54 = vld [vmem:[#allocation8 + $0x30] sm:$0xff]   ;;  %v595_v56 = vld [vmem:[%s1084_s4 + $0x1] ss:$0 sm:$0xff]  ;;  %s861_s4 = scalar_lea.vmem %s562_s9, 256 }
  0x55   :  { %655 = vmatprep.subr.bf16.mxu0 %v897_v0  ;;  %675 = vmatprep.subr.bf16.mxu1 %v897_v0  ;;  %v772_v55 = vld [vmem:[#allocation8 + $0x38] sm:$0xff]   ;;  %p862_p4 = scmp.ne.s32.totalorder %s562_s9, %s861_s4  ;;  %p867_p6 = scmp.lt.s32.totalorder %s861_s4, %s861_s4 }
  0x57   :  { %p868_p7 = por %p867_p6, %p866_p5 }
  0x58   :  { %656 = vmatpush3.bf16.msra.mxu0 %v743_v5  ;;  %676 = vmatpush3.bf16.msra.mxu1 %v752_v10 }
  0x59   :  { %657 = vmatprep.subr.bf16.mxu0 %v897_v0  ;;  %677 = vmatprep.subr.bf16.mxu1 %v897_v0  ;;  %p869_p8 = pnand %p868_p7, %p862_p4 }
  0x5c   :  { %658 = vmatpush3.bf16.msra.mxu0 %v744_v7  ;;  %678 = vmatpush3.bf16.msra.mxu1 %v753_v12 }
  0x5d   :  { %659 = vmatprep.subr.bf16.mxu0 %v897_v0  ;;  %679 = vmatprep.subr.bf16.mxu1 %v897_v0 }
  0x60   :  { %660 = vmatpush3.bf16.msra.mxu0 %v745_v9  ;;  %680 = vmatpush3.bf16.msra.mxu1 %v754_v14 }
  0x61   :  { %661 = vmatprep.subr.bf16.mxu0 %v897_v0  ;;  %681 = vmatprep.subr.bf16.mxu1 %v897_v0 }
  0x64   :  { %662 = vmatpush3.bf16.msra.mxu0 %v746_v11  ;;  %682 = vmatpush3.bf16.msra.mxu1 %v755_v16 }
  0x65   :  { %663 = vmatprep.subr.bf16.mxu0 %v897_v0  ;;  %683 = vmatprep.subr.bf16.mxu1 %v897_v0 }
  0x68   :  { %664 = vmatpush3.bf16.msra.mxu0 %v747_v13  ;;  %684 = vmatpush3.bf16.msra.mxu1 %v756_v17 }
  0x69   :  { %689 = vmatprep.subr.bf16.mxu0 %v897_v0  ;;  %709 = vmatprep.subr.bf16.mxu1 %v897_v0 }
  0x6b   :  { %666 = vmatmul.mubr.bf16.vlgmr.msra.gmra.mrb[0].mxu0 %v748_v15 }
  0x6c   :  { %705 = vmatprep.mubr.msk.bf16.mxu0 %vm898_vm0, %v897_v0  ;;  %690 = vmatpush3.bf16.msra.mxu0 %v757_v18 }
  0x6d   :  { %691 = vmatprep.subr.bf16.mxu0 %v897_v0 }
  0x70   :  { %692 = vmatpush3.bf16.msra.mxu0 %v758_v19 }
  0x71   :  { %693 = vmatprep.subr.bf16.mxu0 %v897_v0 }
  0x74   :  { %694 = vmatpush3.bf16.msra.mxu0 %v759_v20 }
  0x75   :  { %695 = vmatprep.subr.bf16.mxu0 %v897_v0 }
  0x78   :  { %696 = vmatpush3.bf16.msra.mxu0 %v760_v21 }
  0x79   :  { %697 = vmatprep.subr.bf16.mxu0 %v897_v0 }
  0x7c   :  { %698 = vmatpush3.bf16.msra.mxu0 %v761_v22 }
  0x7d   :  { %699 = vmatprep.subr.bf16.mxu0 %v897_v0 }
  0x80   :  { %700 = vmatpush3.bf16.msra.mxu0 %v762_v33 }
  0x81   :  { %701 = vmatprep.subr.bf16.mxu0 %v897_v0 }
  0x84   :  { %702 = vmatpush3.bf16.msra.mxu0 %v763_v34 }
  0x85   :  { %703 = vmatprep.subr.bf16.mxu0 %v897_v0 }
  0x88   :  { %704 = vmatpush3.bf16.msra.mxu0 %v764_v35 }
 0x13e   :  { %v196_v24 = vpop.f32.mrb[0].mxu0 }
 0x13f   :  { %v197_v25 = vadd.f32 %v575_v23, %v196_v24  ;;  %v667_v26 = vpop.f32.mrb[1].mxu0 }
 0x140   :  { %v199_v27 = vpop.f32.mrb[2].mxu0 }
 0x141   :  { %v200_v28 = vadd.f32 %v575_v23, %v199_v27  ;;  %v668_v29 = vpop.f32.mrb[3].mxu0  ;;  %v203_v30 = vmax.f32 %v197_v25, 0.0 }
 0x143   :  { %v204_v31 = vmax.f32 %v200_v28, 0.0 }
 0x145   :  { %v205_v32 = vpack.c.bf16 %v204_v31, %v203_v30 }
 0x147   :  { %686 = vmatmul.mubr.bf16.vlgmr.msra.gmra.mrb[0].mxu1 %v205_v32 }
 0x148   :  { %725 = vmatprep.mubr.msk.bf16.mxu1 %vm898_vm0, %v897_v0  ;;  %710 = vmatpush3.bf16.msra.mxu1 %v765_v36 }
 0x149   :  { %711 = vmatprep.subr.bf16.mxu1 %v897_v0 }
 0x14c   :  { %712 = vmatpush3.bf16.msra.mxu1 %v766_v37 }
 0x14d   :  { %713 = vmatprep.subr.bf16.mxu1 %v897_v0 }
 0x150   :  { %714 = vmatpush3.bf16.msra.mxu1 %v767_v38 }
 0x151   :  { %715 = vmatprep.subr.bf16.mxu1 %v897_v0 }
 0x154   :  { %716 = vmatpush3.bf16.msra.mxu1 %v768_v39 }
 0x155   :  { %717 = vmatprep.subr.bf16.mxu1 %v897_v0 }
 0x158   :  { %718 = vmatpush3.bf16.msra.mxu1 %v769_v40 }
 0x159   :  { %719 = vmatprep.subr.bf16.mxu1 %v897_v0 }
 0x15c   :  { %720 = vmatpush3.bf16.msra.mxu1 %v770_v53 }
 0x15d   :  { %721 = vmatprep.subr.bf16.mxu1 %v897_v0 }
 0x160   :  { %722 = vmatpush3.bf16.msra.mxu1 %v771_v54 }
 0x161   :  { %723 = vmatprep.subr.bf16.mxu1 %v897_v0  ;;  %v604_v0 = vld [vmem:[%s1086_s6] ss:$0 sm:$0xff] }
 0x164   :  { %724 = vmatpush3.bf16.msra.mxu1 %v772_v55 }
 0x21a   :  { %v311_v42 = vpop.f32.mrb[0].mxu1 }
 0x21b   :  { %v312_v43 = vadd.f32 %v585_v41, %v311_v42  ;;  %v687_v44 = vpop.f32.mrb[1].mxu1 }
 0x21c   :  { %v314_v45 = vpop.f32.mrb[2].mxu1 }
 0x21d   :  { %v318_v46 = vmax.f32 %v312_v43, 0.0  ;;  %v315_v47 = vadd.f32 %v585_v41, %v314_v45  ;;  %v688_v48 = vpop.f32.mrb[3].mxu1 }
 0x21f   :  { %v319_v49 = vmax.f32 %v315_v47, 0.0  ;;  %v320_v50 = vadd.f32 %v318_v46, %v203_v30 }
 0x221   :  { %v321_v51 = vadd.f32 %v319_v49, %v204_v31 }
 0x223   :  { %v322_v52 = vpack.c.bf16 %v321_v51, %v320_v50 }
 0x225   :  { %706 = vmatmul.mubr.bf16.vlgmr.msra.gmra.mrb[4].mxu0 %v322_v52 }
 0x2f8   :  { %v430_v57 = vpop.f32.mrb[4].mxu0 }
 0x2f9   :  { %v431_v58 = vadd.f32 %v595_v56, %v430_v57  ;;  %v707_v59 = vpop.f32.mrb[5].mxu0 }
 0x2fa   :  { %v433_v60 = vpop.f32.mrb[6].mxu0 }
 0x2fb   :  { %v437_v61 = vmax.f32 %v431_v58, 0.0  ;;  %v434_v62 = vadd.f32 %v595_v56, %v433_v60  ;;  %v708_v63 = vpop.f32.mrb[7].mxu0 }
 0x2fd   :  { %v438_v1 = vmax.f32 %v434_v62, 0.0  ;;  %v439_v2 = vadd.f32 %v437_v61, %v320_v50 }
 0x2ff   :  { %v440_v3 = vadd.f32 %v438_v1, %v321_v51 }
 0x301   :  { %v441_v4 = vpack.c.bf16 %v440_v3, %v439_v2 }
 0x303   :  { %726 = vmatmul.mubr.bf16.vlgmr.msra.gmra.mrb[4].mxu1 %v441_v4 }
 0x3d6   :  { %v547_v5 = vpop.f32.mrb[4].mxu1 }
 0x3d7   :  { %v548_v6 = vadd.f32 %v604_v0, %v547_v5  ;;  %v727_v7 = vpop.f32.mrb[5].mxu1 }
 0x3d8   :  { %v550_v8 = vpop.f32.mrb[6].mxu1 }
 0x3d9   :  { %554 = vst [vmem:[#allocation10] sm:$0xff] %v548_v6  ;;  %v551_v9 = vadd.f32 %v604_v0, %v550_v8  ;;  %v728_v10 = vpop.f32.mrb[7].mxu1 }
 0x3db   :  { %555 = vst [vmem:[#allocation10 + $0x8] sm:$0xff] %v551_v9 }
 0x3dc   :  { %872 = shalt.err (!%p869_p8)
}
 0x3dd   :  { %s873_s11 = scalar_lea.hbm %s1087_s7, 256 }
 0x3de   :  { %p874_p9 = scmp.ne.s32.totalorder %s1087_s7, %s873_s11  ;;  %p877_p10 = scmp.lt.u32.totalorder %s873_s11, %s1087_s7 }
 0x3e0   :  { %p879_p11 = pnand %p877_p10, %p874_p9 }
 0x3e2   :  { %882 = shalt.err (!%p879_p11)
}
 0x3e3   :  { %s900_s27 = smov 128   ;;  %s901_s17 = smov 8  }
 0x3e4   :  { %567 = dma.vmem_to_hbm [thread:$0]  %s562_s9, 256, %s1087_s7, [#allocation4], %s900_s27, %s900_s27, %s901_s17  }
 0x3e5   :  { %889 = dma.done.wait [#allocation4], 256  }
 0x3e6   :  { %890 = vsyncadd [#allocation4], 4294967040 }
 0x3e7   :  { %571 = vsyncpa [#allocation3], 1 }
 0x3e8   :  { %572 = vsyncpa [#allocation6], 1 }
 0x3e9   :  { %573 = vsyncpa [#allocation9], 1 }
 0x3ea   :  { %574 = vsyncpa [#allocation4], 1 }

</bundles_post_ra>
